<compile_context>
chip_gen: v7x
topology: tpu7x:2x2x1
jax: 0.10.0
libtpu: 0.0.40
codegen_flags: <defaults>
</compile_context>

<pallas_src>
import jax
import jax.numpy as jnp
from jax.experimental import pallas as pl
from jax.experimental.pallas import tpu as pltpu


def _round_up(x, m):
    return ((x + m - 1) // m) * m


def _vmem_limit_bytes():
    # ~3/4 of physical VMEM, capped at 100 MiB, floor above the 16/32 MiB
    # defaults; safe on v5e/v6e (128 MiB) and v7x (64 MiB).
    try:
        cap = int(pltpu.get_tpu_info().vmem_capacity_bytes)
        return max(32 * 1024 * 1024, min(3 * cap // 4, 100 * 1024 * 1024))
    except Exception:
        return 48 * 1024 * 1024


def _lstm_encoder_kernel(maxlen_ref, emb_ref, w_ih_t_ref, w_hh_t_ref, bias_ref,
                         len_ref, h_out_ref, gx_ref):
    """Length-masked single-layer LSTM over one batch tile.

    maxlen_ref: [nb]       i32 SMEM (scalar prefetch): per-tile max valid length
    emb_ref:    [T*Bt, E]  bf16 rows ordered (t, b) for this batch tile
    w_ih_t_ref: [E, 4H]    bf16 (transposed weight_ih_l0, gate order i,f,g,o)
    w_hh_t_ref: [H, 4H]    bf16 (transposed weight_hh_l0)
    bias_ref:   [1, 4H]    f32  (b_ih + b_hh)
    len_ref:    [Bt, 1]    i32  valid sequence length per batch row
    h_out_ref:  [Bt, H]    f32  final hidden state
    gx_ref:     [T*Bt, 4H] f32  VMEM scratch for the hoisted input projection
    """
    Bt, H = h_out_ref.shape

    # Hoisted input projection: one fat bf16 MXU matmul over every timestep of
    # the tile (f32 accumulation), bias folded in.
    gx_ref[...] = (
        jnp.dot(emb_ref[...], w_ih_t_ref[...],
                preferred_element_type=jnp.float32)
        + bias_ref[...]
    )

    w_hh_t = w_hh_t_ref[...]                 # bf16 [H, 4H]
    lengths = len_ref[...]                   # [Bt, 1] i32
    t_max = maxlen_ref[pl.program_id(0)]     # serial chain only runs to max len

    def step(t, carry):
        h, c = carry
        off = pl.multiple_of(t * Bt, Bt)     # aligned sublane slice of gx
        gates = gx_ref[pl.ds(off, Bt), :] + jnp.dot(
            h.astype(w_hh_t.dtype), w_hh_t,
            preferred_element_type=jnp.float32)              # [Bt, 4H] f32

        i_g = jax.nn.sigmoid(gates[:, 0:H])
        f_g = jax.nn.sigmoid(gates[:, H:2 * H])
        g_g = jnp.tanh(gates[:, 2 * H:3 * H])
        o_g = jax.nn.sigmoid(gates[:, 3 * H:4 * H])

        c_new = f_g * c + i_g * g_g
        h_new = o_g * jnp.tanh(c_new)

        # pack_padded_sequence semantics: freeze state once t >= lengths[b].
        valid = lengths > t
        return jnp.where(valid, h_new, h), jnp.where(valid, c_new, c)

    h0 = jnp.zeros((Bt, H), jnp.float32)
    c0 = jnp.zeros((Bt, H), jnp.float32)
    # Dynamic upper bound skips every fully-padded timestep of this tile.
    # TODO(synk): partial unroll (4-8) once T is realistic (~200 tokens).
    h_final, _ = jax.lax.fori_loop(0, t_max, step, (h0, c0))
    h_out_ref[...] = h_final


def instruction_encoder_forward(tokens, table, w_ih, w_hh, b_ih, b_hh,
                                *, max_batch_tile=128):
    """Glue + Pallas call. tokens: int32 [B, T]. Returns final hidden [B, H]."""
    B, T = tokens.shape
    V, E = table.shape
    H = w_hh.shape[1]
    assert w_ih.shape == (4 * H, E) and w_hh.shape == (4 * H, H)

    # Lane-dense padding of the feature dims (zeros contribute nothing).
    E_pad = _round_up(E, 128)
    H_pad = _round_up(H, 128)

    # Fat batch tile: serial recurrence runs once per tile, not once per 8 rows.
    bt = min(max_batch_tile, _round_up(B, 8))
    B_pad = _round_up(B, bt)
    nb = B_pad // bt

    # Sequence lengths from token ids (padding_idx=0, trailing-only padding).
    lengths = jnp.sum((tokens != 0).astype(jnp.int32), axis=1)            # [B]
    lengths_p = jnp.pad(lengths, (0, B_pad - B))
    len2d = lengths_p.reshape(B_pad, 1)
    tile_maxlen = jnp.max(lengths_p.reshape(nb, bt), axis=1)              # [nb] i32

    # Embedding lookup with the table zero-padded to E_pad columns
    # (nn.Embedding with padding_idx=0 -> row 0 is all zeros).
    table_p = jnp.zeros((V, E_pad), jnp.float32).at[:, :E].set(
        table.astype(jnp.float32))
    emb = jnp.take(table_p, tokens, axis=0)                               # [B, T, E_pad]

    # Time-major per-tile slab [nb*T*bt, E_pad] in bf16 for the MXU.  With the
    # recommended nb == 1 (whole padded batch in one tile) the transpose below
    # is the only relayout in HBM.
    emb = jnp.pad(emb, ((0, B_pad - B), (0, 0), (0, 0)))
    emb2d = (emb.reshape(nb, bt, T, E_pad)
                .transpose(0, 2, 1, 3)
                .reshape(nb * T * bt, E_pad)
                .astype(jnp.bfloat16))

    # Per-gate zero-padding of the weights so gate slices stay lane-aligned.
    w_ih_p = jnp.zeros((4, H_pad, E_pad), jnp.float32).at[:, :H, :E].set(
        w_ih.astype(jnp.float32).reshape(4, H, E))
    w_hh_p = jnp.zeros((4, H_pad, H_pad), jnp.float32).at[:, :H, :H].set(
        w_hh.astype(jnp.float32).reshape(4, H, H))
    bias_p = jnp.zeros((4, H_pad), jnp.float32).at[:, :H].set(
        (b_ih + b_hh).astype(jnp.float32).reshape(4, H)).reshape(1, 4 * H_pad)

    w_ih_t = w_ih_p.reshape(4 * H_pad, E_pad).T.astype(jnp.bfloat16)      # [E_pad, 4H_pad]
    w_hh_t = w_hh_p.reshape(4 * H_pad, H_pad).T.astype(jnp.bfloat16)      # [H_pad, 4H_pad]

    grid_spec = pltpu.PrefetchScalarGridSpec(
        num_scalar_prefetch=1,                    # per-tile max lengths -> SMEM
        grid=(nb,),
        in_specs=[
            pl.BlockSpec((T * bt, E_pad), lambda b, ml: (b, 0)),          # emb slab
            pl.BlockSpec((E_pad, 4 * H_pad), lambda b, ml: (0, 0)),       # W_ih^T
            pl.BlockSpec((H_pad, 4 * H_pad), lambda b, ml: (0, 0)),       # W_hh^T
            pl.BlockSpec((1, 4 * H_pad), lambda b, ml: (0, 0)),           # bias
            pl.BlockSpec((bt, 1), lambda b, ml: (b, 0)),                  # lengths
        ],
        out_specs=pl.BlockSpec((bt, H_pad), lambda b, ml: (b, 0)),
        scratch_shapes=[pltpu.VMEM((T * bt, 4 * H_pad), jnp.float32)],
    )

    out = pl.pallas_call(
        _lstm_encoder_kernel,
        out_shape=jax.ShapeDtypeStruct((B_pad, H_pad), jnp.float32),
        grid_spec=grid_spec,
        compiler_params=pltpu.CompilerParams(
            dimension_semantics=("parallel",),
            vmem_limit_bytes=_vmem_limit_bytes()),
    )(tile_maxlen, emb2d, w_ih_t, w_hh_t, bias_p, len2d)

    return out[:B, :H]


def reference_forward(tokens, table, w_ih, w_hh, b_ih, b_hh):
    """Pure-JAX f32 reference mirroring the PyTorch forward semantics."""
    emb = table[tokens]                                                   # [B, T, E]
    lengths = jnp.sum((tokens != 0).astype(jnp.int32), axis=1)            # [B]
    B, T, E = emb.shape
    H = w_hh.shape[1]

    def step(carry, t):
        h, c = carry
        x_t = emb[:, t, :]
        gates = x_t @ w_ih.T + h @ w_hh.T + b_ih + b_hh
        i = jax.nn.sigmoid(gates[:, :H])
        f = jax.nn.sigmoid(gates[:, H:2 * H])
        g = jnp.tanh(gates[:, 2 * H:3 * H])
        o = jax.nn.sigmoid(gates[:, 3 * H:])
        c_new = f * c + i * g
        h_new = o * jnp.tanh(c_new)
        valid = (t < lengths)[:, None]
        return (jnp.where(valid, h_new, h), jnp.where(valid, c_new, c)), None

    (h, _), _ = jax.lax.scan(
        step, (jnp.zeros((B, H), jnp.float32), jnp.zeros((B, H), jnp.float32)),
        jnp.arange(T))
    return h


if __name__ == "__main__":
    B, T, E, H, V = 2, 8, 32, 32, 64

    key = jax.random.PRNGKey(0)
    k_tab, k_ih, k_hh, k_bi, k_bh, k_tok = jax.random.split(key, 6)

    table = 0.1 * jax.random.normal(k_tab, (V, E), jnp.float32)
    table = table.at[0].set(0.0)                       # padding_idx=0
    w_ih = 0.1 * jax.random.normal(k_ih, (4 * H, E), jnp.float32)
    w_hh = 0.1 * jax.random.normal(k_hh, (4 * H, H), jnp.float32)
    b_ih = 0.1 * jax.random.normal(k_bi, (4 * H,), jnp.float32)
    b_hh = 0.1 * jax.random.normal(k_bh, (4 * H,), jnp.float32)

    seq_lengths = jnp.array([6, 4], jnp.int32)
    tok = jax.random.randint(k_tok, (B, T), 1, V, jnp.int32)
    tok = jnp.where(jnp.arange(T)[None, :] < seq_lengths[:, None], tok, 0)

    out = instruction_encoder_forward(tok, table, w_ih, w_hh, b_ih, b_hh)
    out = jax.block_until_ready(out)

    ref = reference_forward(tok, table, w_ih, w_hh, b_ih, b_hh)
    assert out.shape == (B, H)
    # bf16 MXU inputs (f32 accumulation) vs f32 reference -> loosened tolerance.
    assert jnp.allclose(out, ref, atol=1e-2, rtol=1e-2), \
        float(jnp.max(jnp.abs(out - ref)))

    print("KERNEL_OK")
</pallas_src>

<mosaic_0001>
module attributes {stable_mosaic.version = 11 : i64} {
  func.func @_lstm_encoder_kernel(%arg0: i32, %arg1: memref<1xi32, #tpu.memory_space<smem>>, %arg2: memref<64x128xbf16, #tpu.memory_space<vmem>>, %arg3: memref<128x512xbf16, #tpu.memory_space<vmem>>, %arg4: memref<128x512xbf16, #tpu.memory_space<vmem>>, %arg5: memref<1x512xf32, #tpu.memory_space<vmem>>, %arg6: memref<8x1xi32, #tpu.memory_space<vmem>>, %arg7: memref<8x128xf32, #tpu.memory_space<vmem>>, %arg8: memref<64x512xf32, #tpu.memory_space<vmem>>) attributes {dimension_semantics = [#tpu.dimension_semantics<parallel>], iteration_bounds = array<i64: 1>, scalar_prefetch = 1 : i64, scratch_operands = 1 : i64, tpu.core_type = #tpu.core_type<tc>, window_params = [{transform_indices = @transform_0, window_bounds = array<i64: 64, 128>}, {pipeline_mode = #tpu.pipeline_mode<synchronous>, transform_indices = @transform_1, window_bounds = array<i64: 128, 512>}, {pipeline_mode = #tpu.pipeline_mode<synchronous>, transform_indices = @transform_2, window_bounds = array<i64: 128, 512>}, {pipeline_mode = #tpu.pipeline_mode<synchronous>, transform_indices = @transform_3, window_bounds = array<i64: 1, 512>}, {transform_indices = @transform_4, window_bounds = array<i64: 8, 1>}, {transform_indices = @transform_5, window_bounds = array<i64: 8, 128>}]} {
    %c0 = arith.constant 0 : index
    %c0_0 = arith.constant 0 : index
    %0 = vector.load %arg2[%c0, %c0_0] : memref<64x128xbf16, #tpu.memory_space<vmem>>, vector<64x128xbf16>
    %c0_1 = arith.constant 0 : index
    %c0_2 = arith.constant 0 : index
    %1 = vector.load %arg3[%c0_1, %c0_2] : memref<128x512xbf16, #tpu.memory_space<vmem>>, vector<128x512xbf16>
    %cst = arith.constant dense<0.000000e+00> : vector<64x512xf32>
    %2 = tpu.matmul %0, %1, %cst {dimension_numbers = #tpu.dot_dimension_numbers<[1], [0], [0], [1], [0, 0, 1, 1], [], []>} : vector<64x128xbf16>, vector<128x512xbf16>, vector<64x512xf32> -> vector<64x512xf32>
    %c0_3 = arith.constant 0 : index
    %c0_4 = arith.constant 0 : index
    %3 = vector.load %arg5[%c0_3, %c0_4] : memref<1x512xf32, #tpu.memory_space<vmem>>, vector<1x512xf32>
    %4 = vector.broadcast %3 : vector<1x512xf32> to vector<64x512xf32>
    %5 = arith.addf %2, %4 : vector<64x512xf32>
    %c0_5 = arith.constant 0 : index
    %c0_6 = arith.constant 0 : index
    %6 = vector.load %arg8[%c0_5, %c0_6] : memref<64x512xf32, #tpu.memory_space<vmem>>, vector<64x512xf32>
    tpu.vector_store %arg8[%c0_5, %c0_6], %5 {strides = array<i32>} : memref<64x512xf32, #tpu.memory_space<vmem>>, vector<64x512xf32>,
    %c0_7 = arith.constant 0 : index
    %c0_8 = arith.constant 0 : index
    %7 = vector.load %arg4[%c0_7, %c0_8] : memref<128x512xbf16, #tpu.memory_space<vmem>>, vector<128x512xbf16>
    %c0_9 = arith.constant 0 : index
    %c0_10 = arith.constant 0 : index
    %8 = vector.load %arg6[%c0_9, %c0_10] : memref<8x1xi32, #tpu.memory_space<vmem>>, vector<8x1xi32>
    %9 = arith.index_cast %arg0 : i32 to index
    %10 = memref.load %arg1[%9] : memref<1xi32, #tpu.memory_space<smem>>
    %cst_11 = arith.constant 0.000000e+00 : f32
    %11 = vector.broadcast %cst_11 : f32 to vector<8x128xf32>
    %cst_12 = arith.constant 0.000000e+00 : f32
    %12 = vector.broadcast %cst_12 : f32 to vector<8x128xf32>
    %c0_i32 = arith.constant 0 : i32
    %13 = arith.subi %10, %c0_i32 : i32
    %14 = arith.addi %c0_i32, %13 : i32
    %c1_i32 = arith.constant 1 : i32
    %15:2 = scf.for %arg9 = %c0_i32 to %14 step %c1_i32 iter_args(%arg10 = %11, %arg11 = %12) -> (vector<8x128xf32>, vector<8x128xf32>)  : i32 {
      %c8_i32 = arith.constant 8 : i32
      %17 = arith.muli %arg9, %c8_i32 : i32
      %18 = tpu.assume_multiple %17, 8 : i32
      %19 = arith.index_cast %18 : i32 to index
      %c0_15 = arith.constant 0 : index
      %20 = vector.load %arg8[%19, %c0_15] : memref<64x512xf32, #tpu.memory_space<vmem>>, vector<8x512xf32>
      %21 = arith.truncf %arg10 : vector<8x128xf32> to vector<8x128xbf16>
      %cst_16 = arith.constant dense<0.000000e+00> : vector<8x512xf32>
      %22 = tpu.matmul %21, %7, %cst_16 {dimension_numbers = #tpu.dot_dimension_numbers<[1], [0], [0], [1], [0, 0, 1, 1], [], []>} : vector<8x128xbf16>, vector<128x512xbf16>, vector<8x512xf32> -> vector<8x512xf32>
      %23 = arith.addf %20, %22 : vector<8x512xf32>
      %24 = vector.extract_strided_slice %23 {offsets = [0, 0], sizes = [8, 128], strides = [1, 1]} : vector<8x512xf32> to vector<8x128xf32>
      %25 = arith.negf %24 : vector<8x128xf32>
      %26 = math.exp %25 : vector<8x128xf32>
      %cst_17 = arith.constant 1.000000e+00 : f32
      %27 = vector.broadcast %cst_17 : f32 to vector<8x128xf32>
      %28 = arith.addf %27, %26 : vector<8x128xf32>
      %29 = arith.divf %27, %28 : vector<8x128xf32>
      %30 = vector.extract_strided_slice %23 {offsets = [0, 128], sizes = [8, 128], strides = [1, 1]} : vector<8x512xf32> to vector<8x128xf32>
      %31 = arith.negf %30 : vector<8x128xf32>
      %32 = math.exp %31 : vector<8x128xf32>
      %cst_18 = arith.constant 1.000000e+00 : f32
      %33 = vector.broadcast %cst_18 : f32 to vector<8x128xf32>
      %34 = arith.addf %33, %32 : vector<8x128xf32>
      %35 = arith.divf %33, %34 : vector<8x128xf32>
      %36 = vector.extract_strided_slice %23 {offsets = [0, 256], sizes = [8, 128], strides = [1, 1]} : vector<8x512xf32> to vector<8x128xf32>
      %37 = math.tanh %36 : vector<8x128xf32>
      %38 = vector.extract_strided_slice %23 {offsets = [0, 384], sizes = [8, 128], strides = [1, 1]} : vector<8x512xf32> to vector<8x128xf32>
      %39 = arith.negf %38 : vector<8x128xf32>
      %40 = math.exp %39 : vector<8x128xf32>
      %cst_19 = arith.constant 1.000000e+00 : f32
      %41 = vector.broadcast %cst_19 : f32 to vector<8x128xf32>
      %42 = arith.addf %41, %40 : vector<8x128xf32>
      %43 = arith.divf %41, %42 : vector<8x128xf32>
      %44 = arith.mulf %35, %arg11 : vector<8x128xf32>
      %45 = arith.mulf %29, %37 : vector<8x128xf32>
      %46 = arith.addf %44, %45 : vector<8x128xf32>
      %47 = math.tanh %46 : vector<8x128xf32>
      %48 = arith.mulf %43, %47 : vector<8x128xf32>
      %49 = vector.broadcast %arg9 : i32 to vector<8x1xi32>
      %50 = arith.cmpi sgt, %8, %49 : vector<8x1xi32>
      %51 = vector.shape_cast %50 : vector<8x1xi1> to vector<8x1xi1>
      %52 = vector.broadcast %51 : vector<8x1xi1> to vector<8x128xi1>
      %53 = arith.select %52, %48, %arg10 : vector<8x128xi1>, vector<8x128xf32>
      %54 = vector.shape_cast %50 : vector<8x1xi1> to vector<8x1xi1>
      %55 = vector.broadcast %54 : vector<8x1xi1> to vector<8x128xi1>
      %56 = arith.select %55, %46, %arg11 : vector<8x128xi1>, vector<8x128xf32>
      scf.yield %53, %56 : vector<8x128xf32>, vector<8x128xf32>
    }
    %c0_13 = arith.constant 0 : index
    %c0_14 = arith.constant 0 : index
    %16 = vector.load %arg7[%c0_13, %c0_14] : memref<8x128xf32, #tpu.memory_space<vmem>>, vector<8x128xf32>
    tpu.vector_store %arg7[%c0_13, %c0_14], %15#0 {strides = array<i32>} : memref<8x128xf32, #tpu.memory_space<vmem>>, vector<8x128xf32>,
    return
  }
  func.func @transform_0(%arg0: i32, %arg1: memref<1xi32, #tpu.memory_space<smem>>) -> (i32, i32) {
    %c0_i32 = arith.constant 0 : i32
    %c0_i32_0 = arith.constant 0 : i32
    return %arg0, %c0_i32 : i32, i32
  }
  func.func @transform_1(%arg0: i32, %arg1: memref<1xi32, #tpu.memory_space<smem>>) -> (i32, i32) {
    %c0_i32 = arith.constant 0 : i32
    %c0_i32_0 = arith.constant 0 : i32
    %c0_i32_1 = arith.constant 0 : i32
    return %c0_i32, %c0_i32_0 : i32, i32
  }
  func.func @transform_2(%arg0: i32, %arg1: memref<1xi32, #tpu.memory_space<smem>>) -> (i32, i32) {
    %c0_i32 = arith.constant 0 : i32
    %c0_i32_0 = arith.constant 0 : i32
    %c0_i32_1 = arith.constant 0 : i32
    return %c0_i32, %c0_i32_0 : i32, i32
  }
  func.func @transform_3(%arg0: i32, %arg1: memref<1xi32, #tpu.memory_space<smem>>) -> (i32, i32) {
    %c0_i32 = arith.constant 0 : i32
    %c0_i32_0 = arith.constant 0 : i32
    %c0_i32_1 = arith.constant 0 : i32
    return %c0_i32, %c0_i32_0 : i32, i32
  }
  func.func @transform_4(%arg0: i32, %arg1: memref<1xi32, #tpu.memory_space<smem>>) -> (i32, i32) {
    %c0_i32 = arith.constant 0 : i32
    %c0_i32_0 = arith.constant 0 : i32
    return %arg0, %c0_i32 : i32, i32
  }
  func.func @transform_5(%arg0: i32, %arg1: memref<1xi32, #tpu.memory_space<smem>>) -> (i32, i32) {
    %c0_i32 = arith.constant 0 : i32
    %c0_i32_0 = arith.constant 0 : i32
    return %arg0, %c0_i32 : i32, i32
  }
}

</mosaic_0001>

<bundles_post_ra>
// kernel: tpu_custom_call.1
= control target key start
LH: loop header
LB: loop body
LE: loop exit
PB: predicated region body
PF: predicated region fallthrough
CT: control target
= control target key end

     0   :  { %12 = vsyncpa [#allocation6], 0  ;;  %s1488_s0 = inlined_call_operand.<no memory space> [shape: s32[1], index: 0, kind: input, shape index: {}]   ;;  %s1489_s1 = inlined_call_operand.hbm [shape: bf16[64,128], index: 1, kind: input, shape index: {}]   ;;  %s1490_s2 = inlined_call_operand.hbm [shape: bf16[128,512], index: 2, kind: input, shape index: {}]   ;;  %s1491_s3 = inlined_call_operand.hbm [shape: bf16[128,512], index: 3, kind: input, shape index: {}]   ;;  %s1492_s4 = inlined_call_operand.vmem [shape: f32[1,512], index: 4, kind: input, shape index: {}]   ;;  %s1493_s5 = inlined_call_operand.vmem [shape: s32[8,1], index: 5, kind: input, shape index: {}]   ;;  %s1494_s6 = inlined_call_operand.hbm [shape: f32[8,128], index: 6, kind: output, shape index: {}]  }
   0x1   :  { %13 = vsyncpa [#allocation9], 0 }
   0x2   :  { %14 = vsyncpa [#allocation7], 0  ;;  %s1164_s21 = smov [#allocation8]   ;;  %s1038_s25 = scalar_lea.hbm %s1490_s2, 4096 }
   0x3   :  { %s32_s22 = sshll.u32 %s1164_s21, 4  ;;  %p1039_p0 = scmp.ne.s32.totalorder %s1490_s2, %s1038_s25  ;;  %s33_s22 = int_to_ptr.vmem [resolvable:$true] %s32_s22 }
   0x4   :  { %p1042_p1 = scmp.lt.u32.totalorder %s1038_s25, %s1490_s2 }
   0x6   :  { %p1044_p2 = pnand %p1042_p1, %p1039_p0 }
   0x8   :  { %1047 = shalt.err (!%p1044_p2)
}
   0x9   :  { %s1048_s30 = scalar_lea.vmem %s33_s22, 4096  ;;  %p1053_p4 = scmp.lt.s32.totalorder %s33_s22, %s33_s22 }
   0xa   :  { %p1049_p3 = scmp.ne.s32.totalorder %s33_s22, %s1048_s30  ;;  %p1054_p5 = scmp.lt.s32.totalorder %s1048_s30, %s1048_s30 }
   0xc   :  { %p1055_p6 = por %p1054_p5, %p1053_p4 }
   0xe   :  { %p1056_p7 = pnand %p1055_p6, %p1049_p3 }
  0x10   :  { %1059 = shalt.err (!%p1056_p7)
}
  0x11   :  { %s1165_s7 = smov 256   ;;  %s1166_s8 = smov 16  }
  0x12   :  { %38 = dma.hbm_to_vmem [thread:$0]  %s1490_s2, 4096, %s33_s22, [#allocation9], %s1165_s7, %s1165_s7, %s1166_s8  }
  0x13   :  { %s1167_s11 = smov [#allocation5]   ;;  %s1060_s15 = scalar_lea.hbm %s1489_s1, 512 }
  0x14   :  { %s20_s12 = sshll.u32 %s1167_s11, 4  ;;  %p1061_p8 = scmp.ne.s32.totalorder %s1489_s1, %s1060_s15  ;;  %s21_s12 = int_to_ptr.vmem [resolvable:$true] %s20_s12 }
  0x15   :  { %p1064_p9 = scmp.lt.u32.totalorder %s1060_s15, %s1489_s1 }
  0x17   :  { %p1066_p10 = pnand %p1064_p9, %p1061_p8 }
  0x19   :  { %1069 = shalt.err (!%p1066_p10)
}
  0x1a   :  { %s1070_s20 = scalar_lea.vmem %s21_s12, 512  ;;  %p1075_p12 = scmp.lt.s32.totalorder %s21_s12, %s21_s12 }
  0x1b   :  { %p1071_p11 = scmp.ne.s32.totalorder %s21_s12, %s1070_s20  ;;  %p1076_p13 = scmp.lt.s32.totalorder %s1070_s20, %s1070_s20 }
  0x1d   :  { %p1077_p0 = por %p1076_p13, %p1075_p12 }
  0x1f   :  { %p1078_p1 = pnand %p1077_p0, %p1071_p11 }
  0x21   :  { %1081 = shalt.err (!%p1078_p1)
}
  0x22   :  { %s1168_s2 = smov 64   ;;  %s1169_s21 = smov 4  }
  0x23   :  { %26 = dma.hbm_to_vmem [thread:$0]  %s1489_s1, 512, %s21_s12, [#allocation6], %s1168_s2, %s1168_s2, %s1169_s21  }
  0x24   :  { %s1170_s24 = smov [#allocation10]   ;;  %s1082_s28 = scalar_lea.hbm %s1491_s3, 4096 }
  0x25   :  { %s44_s25 = sshll.u32 %s1170_s24, 4  ;;  %p1083_p2 = scmp.ne.s32.totalorder %s1491_s3, %s1082_s28  ;;  %s45_s25 = int_to_ptr.vmem [resolvable:$true] %s44_s25 }
  0x26   :  { %p1086_p3 = scmp.lt.u32.totalorder %s1082_s28, %s1491_s3 }
  0x28   :  { %p1088_p4 = pnand %p1086_p3, %p1083_p2 }
  0x2a   :  { %1091 = shalt.err (!%p1088_p4)
}
  0x2b   :  { %s1092_s11 = scalar_lea.vmem %s45_s25, 4096  ;;  %p1097_p6 = scmp.lt.s32.totalorder %s45_s25, %s45_s25 }
  0x2c   :  { %p1093_p5 = scmp.ne.s32.totalorder %s45_s25, %s1092_s11  ;;  %p1098_p7 = scmp.lt.s32.totalorder %s1092_s11, %s1092_s11 }
  0x2e   :  { %p1099_p8 = por %p1098_p7, %p1097_p6 }
  0x30   :  { %p1100_p9 = pnand %p1099_p8, %p1093_p5 }
  0x32   :  { %1103 = shalt.err (!%p1100_p9)
}
  0x33   :  { %50 = dma.hbm_to_vmem [thread:$0]  %s1491_s3, 4096, %s45_s25, [#allocation9], %s1165_s7, %s1165_s7, %s1166_s8  }
  0x34   :  { %1142 = dma.done.wait [#allocation6], 512  }
  0x35   :  { %1143 = vsyncadd [#allocation6], 4294966784 }
  0x36   :  { %1144 = dma.done.wait [#allocation9], 8192  }
  0x37   :  { %1145 = vsyncadd [#allocation9], 4294959104  ;;  %v1171_v0 = vmov 0   ;;  %v1253_v1 = vld [vmem:[#allocation10] sm:$0xff]  ;;  %v1255_v2 = vld [vmem:[#allocation10 + $0x8] sm:$0xff]  ;;  %p887_p10 = scmp.le.s32.totalorder %s1488_s0, 0 }
  0x38   :  { %343 = vmatprep.mubr.bf16.mxu0 %v1171_v0  ;;  %416 = vmatprep.mubr.bf16.mxu1 %v1171_v0  ;;  %v1257_v3 = vld [vmem:[#allocation10 + $0x10] sm:$0xff]  ;;  %v1259_v4 = vld [vmem:[#allocation10 + $0x18] sm:$0xff]  ;;  %v1261_v5 = vld [vmem:[#allocation10 + $0x20] sm:$0xff]  ;;  %s1380_s14 = smov (!%p887_p10), 0  }
  0x39   :  { %v1263_v6 = vld [vmem:[#allocation10 + $0x28] sm:$0xff]  ;;  %v1265_v7 = vld [vmem:[#allocation10 + $0x30] sm:$0xff]  ;;  %v1267_v8 = vld [vmem:[#allocation10 + $0x38] sm:$0xff] }
  0x3a   :  { %v1269_v9 = vld [vmem:[#allocation10 + $0x40] sm:$0xff]  ;;  %v1271_v10 = vld [vmem:[#allocation10 + $0x48] sm:$0xff]  ;;  %v1273_v11 = vld [vmem:[#allocation10 + $0x50] sm:$0xff] }
  0x3b   :  { %v1275_v12 = vld [vmem:[#allocation10 + $0x58] sm:$0xff]  ;;  %v1277_v13 = vld [vmem:[#allocation10 + $0x60] sm:$0xff]  ;;  %v1279_v14 = vld [vmem:[#allocation10 + $0x68] sm:$0xff] }
  0x3c   :  { %v1281_v15 = vld [vmem:[#allocation10 + $0x70] sm:$0xff]  ;;  %v1283_v16 = vld [vmem:[#allocation10 + $0x78] sm:$0xff]  ;;  %v1285_v17 = vld [vmem:[#allocation10 + $0x80] sm:$0xff] }
  0x3d   :  { %v1287_v18 = vld [vmem:[#allocation10 + $0x88] sm:$0xff]  ;;  %v1289_v19 = vld [vmem:[#allocation10 + $0x90] sm:$0xff]  ;;  %v1291_v20 = vld [vmem:[#allocation10 + $0x98] sm:$0xff] }
  0x3e   :  { %v1293_v21 = vld [vmem:[#allocation10 + $0xa0] sm:$0xff]  ;;  %v1295_v22 = vld [vmem:[#allocation10 + $0xa8] sm:$0xff]  ;;  %v1297_v23 = vld [vmem:[#allocation10 + $0xb0] sm:$0xff] }
  0x3f   :  { %v1299_v24 = vld [vmem:[#allocation10 + $0xb8] sm:$0xff]  ;;  %v1301_v25 = vld [vmem:[#allocation10 + $0xc0] sm:$0xff]  ;;  %v1303_v26 = vld [vmem:[#allocation10 + $0xc8] sm:$0xff] }
  0x40   :  { %v1305_v27 = vld [vmem:[#allocation10 + $0xd0] sm:$0xff]  ;;  %v1307_v28 = vld [vmem:[#allocation10 + $0xd8] sm:$0xff]  ;;  %v1309_v29 = vld [vmem:[#allocation10 + $0xe0] sm:$0xff] }
  0x41   :  { %v1311_v30 = vld [vmem:[#allocation10 + $0xe8] sm:$0xff]  ;;  %v1313_v31 = vld [vmem:[#allocation10 + $0xf0] sm:$0xff]  ;;  %v1315_v32 = vld [vmem:[#allocation10 + $0xf8] sm:$0xff] }
  0x42   :  { %v1320_v33 = vld [vmem:[%s1493_s5] sm:$0xff]  ;;  %v971_v35 = vld [vmem:[#allocation8 + $0xc] ss:$16 sps:$4 sm:$0xff]   ;;  %v974_v37 = vld [vmem:[#allocation8 + $0x8] ss:$16 sps:$4 sm:$0xff]  }
  0x43   :  { %v969_v34 = vld [vmem:[#allocation8 + $0x4] ss:$16 sps:$4 sm:$0xff]   ;;  %v973_v36 = vld [vmem:[#allocation8] ss:$16 sps:$4 sm:$0xff]   ;;  %384 = vmatprep.subr.bf16.mxu1 %v971_v35  ;;  %v977_v39 = vld [vmem:[#allocation8 + $0x2c] ss:$16 sps:$4 sm:$0xff]  }
  0x44   :  { %311 = vmatprep.subr.bf16.mxu0 %v969_v34  ;;  %v975_v38 = vld [vmem:[#allocation8 + $0x24] ss:$16 sps:$4 sm:$0xff]   ;;  %385 = vmatpush1.bf16.msra.mxu1 %v974_v37  ;;  %v979_v40 = vld [vmem:[#allocation8 + $0x20] ss:$16 sps:$4 sm:$0xff]   ;;  %v980_v41 = vld [vmem:[#allocation8 + $0x28] ss:$16 sps:$4 sm:$0xff]  }
  0x45   :  { %312 = vmatpush1.bf16.msra.mxu0 %v973_v36  ;;  %386 = vmatprep.subr.bf16.mxu1 %v977_v39  ;;  %v981_v42 = vld [vmem:[#allocation8 + $0x44] ss:$16 sps:$4 sm:$0xff]   ;;  %v983_v43 = vld [vmem:[#allocation8 + $0x4c] ss:$16 sps:$4 sm:$0xff]   ;;  %v985_v44 = vld [vmem:[#allocation8 + $0x40] ss:$16 sps:$4 sm:$0xff]  }
  0x46   :  { %313 = vmatprep.subr.bf16.mxu0 %v975_v38  ;;  %v986_v45 = vld [vmem:[#allocation8 + $0x48] ss:$16 sps:$4 sm:$0xff]   ;;  %v987_v46 = vld [vmem:[#allocation8 + $0x64] ss:$16 sps:$4 sm:$0xff]   ;;  %v989_v47 = vld [vmem:[#allocation8 + $0x6c] ss:$16 sps:$4 sm:$0xff]  }
  0x47   :  { %v991_v48 = vld [vmem:[#allocation8 + $0x60] ss:$16 sps:$4 sm:$0xff]   ;;  %v992_v49 = vld [vmem:[#allocation8 + $0x68] ss:$16 sps:$4 sm:$0xff]   ;;  %v993_v50 = vld [vmem:[#allocation8 + $0x84] ss:$16 sps:$4 sm:$0xff]  }
  0x48   :  { %387 = vmatpush1.bf16.msra.mxu1 %v980_v41  ;;  %v995_v51 = vld [vmem:[#allocation8 + $0x8c] ss:$16 sps:$4 sm:$0xff]   ;;  %v997_v52 = vld [vmem:[#allocation8 + $0x80] ss:$16 sps:$4 sm:$0xff]   ;;  %v998_v53 = vld [vmem:[#allocation8 + $0x88] ss:$16 sps:$4 sm:$0xff]  }
  0x49   :  { %314 = vmatpush1.bf16.msra.mxu0 %v979_v40  ;;  %388 = vmatprep.subr.bf16.mxu1 %v983_v43  ;;  %v999_v54 = vld [vmem:[#allocation8 + $0xa4] ss:$16 sps:$4 sm:$0xff]   ;;  %v1001_v55 = vld [vmem:[#allocation8 + $0xac] ss:$16 sps:$4 sm:$0xff]   ;;  %v1003_v56 = vld [vmem:[#allocation8 + $0xa0] ss:$16 sps:$4 sm:$0xff]   ;;  %v107_v40 = vlaneseq }
  0x4a   :  { %315 = vmatprep.subr.bf16.mxu0 %v981_v42  ;;  %v1004_v57 = vld [vmem:[#allocation8 + $0xa8] ss:$16 sps:$4 sm:$0xff]   ;;  %v1005_v58 = vld [vmem:[#allocation8 + $0xc4] ss:$16 sps:$4 sm:$0xff]   ;;  %v1007_v59 = vld [vmem:[#allocation8 + $0xcc] ss:$16 sps:$4 sm:$0xff]  }
  0x4b   :  { %v1009_v60 = vld [vmem:[#allocation8 + $0xc0] ss:$16 sps:$4 sm:$0xff]   ;;  %v1010_v61 = vld [vmem:[#allocation8 + $0xc8] ss:$16 sps:$4 sm:$0xff]   ;;  %v1011_v62 = vld [vmem:[#allocation8 + $0xe4] ss:$16 sps:$4 sm:$0xff]  }
  0x4c   :  { %389 = vmatpush1.bf16.msra.mxu1 %v986_v45  ;;  %v1013_v63 = vld [vmem:[#allocation8 + $0xec] ss:$16 sps:$4 sm:$0xff]   ;;  %v1015_v34 = vld [vmem:[#allocation8 + $0xe0] ss:$16 sps:$4 sm:$0xff]   ;;  %v1016_v35 = vld [vmem:[#allocation8 + $0xe8] ss:$16 sps:$4 sm:$0xff]  }
  0x4d   :  { %316 = vmatpush1.bf16.msra.mxu0 %v985_v44  ;;  %390 = vmatprep.subr.bf16.mxu1 %v989_v47  ;;  %v1017_v36 = vld [vmem:[#allocation5] sm:$0xff]   ;;  %v1018_v37 = vld [vmem:[#allocation5 + $0x8] sm:$0xff]   ;;  %v1019_v38 = vld [vmem:[#allocation5 + $0x10] sm:$0xff]   ;;  %v108_v41 = vshrl.u32 %v107_v40, 7 }
  0x4e   :  { %317 = vmatprep.subr.bf16.mxu0 %v987_v46  ;;  %v1020_v39 = vld [vmem:[#allocation5 + $0x18] sm:$0xff]   ;;  %v105_v44 = vld [vmem:[%s1492_s4] sm:$0xf] }
  0x4f   :  { %v109_v42 = vsub.s32 0, %v108_v41  ;;  %v117_v43 = vsub.s32 2, %v108_v41  ;;  %v113_v45 = vsub.s32 1, %v108_v41  ;;  %v121_v46 = vsub.s32 3, %v108_v41 }
  0x50   :  { %391 = vmatpush1.bf16.msra.mxu1 %v992_v49 }
  0x51   :  { %318 = vmatpush1.bf16.msra.mxu0 %v991_v48  ;;  %392 = vmatprep.subr.bf16.mxu1 %v995_v51  ;;  %v1331_v47 = vrot.slane %v105_v44, %v109_v42  ;;  %v1333_v48 = vrot.slane %v105_v44, %v117_v43  ;;  %v1335_v49 = vrot.slane %v105_v44, %v113_v45 }
  0x52   :  { %319 = vmatprep.subr.bf16.mxu0 %v993_v50 }
  0x54   :  { %393 = vmatpush1.bf16.msra.mxu1 %v998_v53 }
  0x55   :  { %320 = vmatpush1.bf16.msra.mxu0 %v997_v52  ;;  %394 = vmatprep.subr.bf16.mxu1 %v1001_v55 }
  0x56   :  { %321 = vmatprep.subr.bf16.mxu0 %v999_v54 }
  0x58   :  { %395 = vmatpush1.bf16.msra.mxu1 %v1004_v57 }
  0x59   :  { %322 = vmatpush1.bf16.msra.mxu0 %v1003_v56  ;;  %396 = vmatprep.subr.bf16.mxu1 %v1007_v59 }
  0x5a   :  { %323 = vmatprep.subr.bf16.mxu0 %v1005_v58 }
  0x5c   :  { %397 = vmatpush1.bf16.msra.mxu1 %v1010_v61 }
  0x5d   :  { %324 = vmatpush1.bf16.msra.mxu0 %v1009_v60  ;;  %398 = vmatprep.subr.bf16.mxu1 %v1013_v63 }
  0x5e   :  { %325 = vmatprep.subr.bf16.mxu0 %v1011_v62 }
  0x60   :  { %399 = vmatpush1.bf16.msra.mxu1 %v1016_v35 }
  0x61   :  { %326 = vmatpush1.bf16.msra.mxu0 %v1015_v34 }
  0x63   :  { %417 = vmatmul.mubr.bf16.vlgmr.msra.gmra.mrb[0].mxu1 %v1017_v36 }
  0x64   :  { %344 = vmatmul.mubr.bf16.vlgmr.msra.gmra.mrb[0].mxu0 %v1017_v36  ;;  %426 = vmatprep.mubr.bf16.mxu1 %v1171_v0 }
  0x65   :  { %353 = vmatprep.mubr.bf16.mxu0 %v1171_v0 }
  0x6b   :  { %427 = vmatmul.mubr.bf16.gmra.mrb[4].mxu1 %v1018_v37 }
  0x6c   :  { %354 = vmatmul.mubr.bf16.gmra.mrb[4].mxu0 %v1018_v37  ;;  %436 = vmatprep.mubr.bf16.mxu1 %v1171_v0 }
  0x6d   :  { %363 = vmatprep.mubr.bf16.mxu0 %v1171_v0 }
  0x73   :  { %437 = vmatmul.mubr.bf16.gmra.mrb[8].mxu1 %v1019_v38 }
  0x74   :  { %364 = vmatmul.mubr.bf16.gmra.mrb[8].mxu0 %v1019_v38  ;;  %446 = vmatprep.mubr.bf16.mxu1 %v1171_v0 }
  0x75   :  { %373 = vmatprep.mubr.bf16.mxu0 %v1171_v0  ;;  %v1337_v0 = vrot.slane %v105_v44, %v121_v46 }
  0x7b   :  { %447 = vmatmul.mubr.bf16.gmra.mrb[12].mxu1 %v1020_v39 }
  0x7c   :  { %374 = vmatmul.mubr.bf16.gmra.mrb[12].mxu0 %v1020_v39 }
 0x136   :  { %v418_v51 = vpop.f32.mrb[0].mxu1 }
 0x137   :  { %v345_v50 = vpop.f32.mrb[0].mxu0  ;;  %v419_v53 = vadd.f32 %v418_v51, %v1333_v48  ;;  %v420_v55 = vpop.f32.mrb[1].mxu1 }
 0x138   :  { %v346_v52 = vadd.f32 %v345_v50, %v1331_v47  ;;  %v347_v54 = vpop.f32.mrb[1].mxu0  ;;  %v421_v57 = vadd.f32 %v420_v55, %v1337_v0  ;;  %v422_v59 = vpop.f32.mrb[2].mxu1 }
 0x139   :  { %v348_v56 = vadd.f32 %v347_v54, %v1335_v49  ;;  %v349_v58 = vpop.f32.mrb[2].mxu0  ;;  %459 = vst [vmem:[#allocation2 + $0x10] sm:$0xff] %v419_v53  ;;  %v423_v61 = vadd.f32 %v422_v59, %v1333_v48  ;;  %v424_v63 = vpop.f32.mrb[3].mxu1 }
 0x13a   :  { %457 = vst [vmem:[#allocation2] sm:$0xff] %v346_v52  ;;  %v350_v60 = vadd.f32 %v349_v58, %v1331_v47  ;;  %v351_v62 = vpop.f32.mrb[3].mxu0  ;;  %460 = vst [vmem:[#allocation2 + $0x18] sm:$0xff] %v421_v57  ;;  %v425_v35 = vadd.f32 %v424_v63, %v1337_v0 }
 0x13b   :  { %458 = vst [vmem:[#allocation2 + $0x8] sm:$0xff] %v348_v56  ;;  %v352_v34 = vadd.f32 %v351_v62, %v1335_v49  ;;  %463 = vst [vmem:[#allocation2 + $0x30] sm:$0xff] %v423_v61 }
 0x13c   :  { %461 = vst [vmem:[#allocation2 + $0x20] sm:$0xff] %v350_v60  ;;  %464 = vst [vmem:[#allocation2 + $0x38] sm:$0xff] %v425_v35 }
 0x13d   :  { %462 = vst [vmem:[#allocation2 + $0x28] sm:$0xff] %v352_v34 }
 0x13e   :  { %v428_v37 = vpop.f32.mrb[4].mxu1 }
 0x13f   :  { %v355_v36 = vpop.f32.mrb[4].mxu0  ;;  %v429_v39 = vadd.f32 %v428_v37, %v1333_v48  ;;  %v430_v41 = vpop.f32.mrb[5].mxu1 }
 0x140   :  { %v356_v38 = vadd.f32 %v355_v36, %v1331_v47  ;;  %v357_v40 = vpop.f32.mrb[5].mxu0  ;;  %v431_v43 = vadd.f32 %v430_v41, %v1337_v0  ;;  %v432_v45 = vpop.f32.mrb[6].mxu1 }
 0x141   :  { %v358_v42 = vadd.f32 %v357_v40, %v1335_v49  ;;  %v359_v44 = vpop.f32.mrb[6].mxu0  ;;  %467 = vst [vmem:[#allocation2 + $0x50] sm:$0xff] %v429_v39  ;;  %v433_v50 = vadd.f32 %v432_v45, %v1333_v48  ;;  %v434_v52 = vpop.f32.mrb[7].mxu1 }
 0x142   :  { %465 = vst [vmem:[#allocation2 + $0x40] sm:$0xff] %v356_v38  ;;  %v360_v46 = vadd.f32 %v359_v44, %v1331_v47  ;;  %v361_v51 = vpop.f32.mrb[7].mxu0  ;;  %468 = vst [vmem:[#allocation2 + $0x58] sm:$0xff] %v431_v43  ;;  %v435_v54 = vadd.f32 %v434_v52, %v1337_v0 }
 0x143   :  { %466 = vst [vmem:[#allocation2 + $0x48] sm:$0xff] %v358_v42  ;;  %v362_v53 = vadd.f32 %v361_v51, %v1335_v49  ;;  %471 = vst [vmem:[#allocation2 + $0x70] sm:$0xff] %v433_v50 }
 0x144   :  { %469 = vst [vmem:[#allocation2 + $0x60] sm:$0xff] %v360_v46  ;;  %472 = vst [vmem:[#allocation2 + $0x78] sm:$0xff] %v435_v54 }
 0x145   :  { %470 = vst [vmem:[#allocation2 + $0x68] sm:$0xff] %v362_v53 }
 0x146   :  { %v438_v56 = vpop.f32.mrb[8].mxu1 }
 0x147   :  { %v365_v55 = vpop.f32.mrb[8].mxu0  ;;  %v439_v58 = vadd.f32 %v438_v56, %v1333_v48  ;;  %v440_v60 = vpop.f32.mrb[9].mxu1 }
 0x148   :  { %v366_v57 = vadd.f32 %v365_v55, %v1331_v47  ;;  %v367_v59 = vpop.f32.mrb[9].mxu0  ;;  %v441_v62 = vadd.f32 %v440_v60, %v1337_v0  ;;  %v442_v34 = vpop.f32.mrb[10].mxu1  ;;  %v1374_v60 = vmov 0.0  }
 0x149   :  { %v368_v61 = vadd.f32 %v367_v59, %v1335_v49  ;;  %v369_v63 = vpop.f32.mrb[10].mxu0  ;;  %475 = vst [vmem:[#allocation2 + $0x90] sm:$0xff] %v439_v58  ;;  %v443_v36 = vadd.f32 %v442_v34, %v1333_v48  ;;  %v444_v38 = vpop.f32.mrb[11].mxu1 }
 0x14a   :  { %473 = vst [vmem:[#allocation2 + $0x80] sm:$0xff] %v366_v57  ;;  %v370_v35 = vadd.f32 %v369_v63, %v1331_v47  ;;  %v371_v37 = vpop.f32.mrb[11].mxu0  ;;  %476 = vst [vmem:[#allocation2 + $0x98] sm:$0xff] %v441_v62  ;;  %v445_v40 = vadd.f32 %v444_v38, %v1337_v0 }
 0x14b   :  { %474 = vst [vmem:[#allocation2 + $0x88] sm:$0xff] %v368_v61  ;;  %v372_v39 = vadd.f32 %v371_v37, %v1335_v49  ;;  %479 = vst [vmem:[#allocation2 + $0xb0] sm:$0xff] %v443_v36 }
 0x14c   :  { %477 = vst [vmem:[#allocation2 + $0xa0] sm:$0xff] %v370_v35  ;;  %480 = vst [vmem:[#allocation2 + $0xb8] sm:$0xff] %v445_v40 }
 0x14d   :  { %478 = vst [vmem:[#allocation2 + $0xa8] sm:$0xff] %v372_v39 }
 0x14e   :  { %v448_v42 = vpop.f32.mrb[12].mxu1 }
 0x14f   :  { %v375_v41 = vpop.f32.mrb[12].mxu0  ;;  %v449_v44 = vadd.f32 %v448_v42, %v1333_v48  ;;  %v450_v46 = vpop.f32.mrb[13].mxu1  ;;  %844 = sbr.rel (%p887_p10) target bundleno = 636 (0x27c), region = 54 }
 0x150   :  { %v376_v43 = vadd.f32 %v375_v41, %v1331_v47  ;;  %v377_v45 = vpop.f32.mrb[13].mxu0  ;;  %v451_v51 = vadd.f32 %v450_v46, %v1337_v0  ;;  %v452_v53 = vpop.f32.mrb[14].mxu1 }
 0x151   :  { %v378_v50 = vadd.f32 %v377_v45, %v1335_v49  ;;  %v379_v52 = vpop.f32.mrb[14].mxu0  ;;  %483 = vst [vmem:[#allocation2 + $0xd0] sm:$0xff] %v449_v44  ;;  %v453_v55 = vadd.f32 %v452_v53, %v1333_v48  ;;  %v454_v57 = vpop.f32.mrb[15].mxu1  ;;  %v1378_v48 = vmov (!%p887_p10), 0.0  }
 0x152   :  { %481 = vst [vmem:[#allocation2 + $0xc0] sm:$0xff] %v376_v43  ;;  %v380_v54 = vadd.f32 %v379_v52, %v1331_v47  ;;  %v381_v56 = vpop.f32.mrb[15].mxu0  ;;  %484 = vst [vmem:[#allocation2 + $0xd8] sm:$0xff] %v451_v51  ;;  %v455_v59 = vadd.f32 %v454_v57, %v1337_v0  ;;  %v1376_v47 = vmov (!%p887_p10), 0.0  }
 0x153   :  { %482 = vst [vmem:[#allocation2 + $0xc8] sm:$0xff] %v378_v50  ;;  %v382_v58 = vadd.f32 %v381_v56, %v1335_v49  ;;  %487 = vst [vmem:[#allocation2 + $0xf0] sm:$0xff] %v453_v55 }
 0x154   :  { %485 = vst [vmem:[#allocation2 + $0xe0] sm:$0xff] %v380_v54  ;;  %488 = vst [vmem:[#allocation2 + $0xf8] sm:$0xff] %v455_v59 }
 0x155   :  { %486 = vst [vmem:[#allocation2 + $0xe8] sm:$0xff] %v382_v58 }
 0x156 LB: > { %v892_v49 = vcombine.high %v1253_v1, %v1257_v3  ;;  %v891_v0 = vcombine.low %v1253_v1, %v1257_v3  ;;  %v896_v61 = vcombine.high %v1261_v5, %v1265_v7  ;;  %v894_v62 = vcombine.high %v1255_v2, %v1259_v4  ;;  %s888_s15 = sshll.u32 %s1158_s14, 3  ;;  %s1158_s14 = sphi %s1380_s14, %s526_s14   ;;  %v1154_v48 = vphi %v1378_v48, %v1495_v48   ;;  %v1150_v47 = vphi %v1376_v47, %v820_v47  }
 0x157   : > { %v893_v63 = vcombine.low %v1255_v2, %v1259_v4  ;;  %v898_v34 = vcombine.high %v1263_v6, %v1267_v8  ;;  %v895_v35 = vcombine.low %v1261_v5, %v1265_v7  ;;  %v900_v36 = vcombine.high %v1269_v9, %v1273_v11  ;;  %s532_s16 = sshra.s32 %s888_s15, 3 }
 0x158   : > { %702 = vmatprep.subr.bf16.mxu0 %v892_v49  ;;  %743 = vmatprep.subr.bf16.mxu1 %v894_v62  ;;  %v897_v37 = vcombine.low %v1263_v6, %v1267_v8  ;;  %v902_v38 = vcombine.high %v1271_v10, %v1275_v12  ;;  %v1172_v39 = vmov 0   ;;  %v899_v40 = vcombine.low %v1269_v9, %v1273_v11  ;;  %s926_s17 = sshll.u32 %s532_s16, 5 }
 0x159   : > { %703 = vmatpush1.bf16.msra.mxu0 %v891_v0  ;;  %744 = vmatpush1.bf16.msra.mxu1 %v893_v63  ;;  %v904_v41 = vcombine.high %v1277_v13, %v1281_v15  ;;  %v901_v42 = vcombine.low %v1271_v10, %v1275_v12  ;;  %v812_v43 = vstv %s1158_s14  ;;  %v906_v44 = vcombine.high %v1279_v14, %v1283_v16  ;;  %s536_s18 = scalar_lea.vmem [#allocation2], %s926_s17  ;;  %s526_s14 = sadd.s32 1, %s1158_s14  }
 0x15a   : > { %704 = vmatprep.subr.bf16.mxu0 %v896_v61  ;;  %745 = vmatprep.subr.bf16.mxu1 %v898_v34  ;;  %vm813_vm0 = vcmp.gt.s32.totalorder %v1320_v33, %v812_v43  ;;  %v903_v46 = vcombine.low %v1277_v13, %v1281_v15  ;;  %v908_v50 = vcombine.high %v1285_v17, %v1289_v19  ;;  %p525_p11 = scmp.ge.s32.totalorder %s526_s14, %s1488_s0 }
 0x15b   : > { %734 = vmatprep.mubr.bf16.mxu0 %v1172_v39  ;;  %775 = vmatprep.mubr.bf16.mxu1 %v1172_v39  ;;  %v814_v45 = vsel %vm813_vm0, 1, %v1172_v39  ;;  %v905_v51 = vcombine.low %v1279_v14, %v1283_v16  ;;  %v910_v52 = vcombine.high %v1287_v18, %v1291_v20  ;;  %v907_v53 = vcombine.low %v1285_v17, %v1289_v19 }
 0x15c   : > { %1021 = vset.pattern.permute.xlu0 %v1172_v39  ;;  %v912_v54 = vcombine.high %v1293_v21, %v1297_v23  ;;  %v909_v55 = vcombine.low %v1287_v18, %v1291_v20  ;;  %v914_v56 = vcombine.high %v1295_v22, %v1299_v24  ;;  %v911_v57 = vcombine.low %v1293_v21, %v1297_v23 }
 0x15d   : > { %705 = vmatpush1.bf16.msra.mxu0 %v895_v35  ;;  %746 = vmatpush1.bf16.msra.mxu1 %v897_v37  ;;  %v916_v58 = vcombine.high %v1301_v25, %v1305_v27  ;;  %v913_v59 = vcombine.low %v1295_v22, %v1299_v24  ;;  %v918_v60 = vcombine.high %v1303_v26, %v1307_v28  ;;  %v538_v37 = vld [vmem:[%s536_s18 + $0x8] sm:$0xff] }
 0x15e   : > { %706 = vmatprep.subr.bf16.mxu0 %v900_v36  ;;  %747 = vmatprep.subr.bf16.mxu1 %v902_v38  ;;  %v915_v49 = vcombine.low %v1301_v25, %v1305_v27  ;;  %v920_v0 = vcombine.high %v1309_v29, %v1313_v31  ;;  %v917_v61 = vcombine.low %v1303_v26, %v1307_v28  ;;  %v537_v36 = vld [vmem:[%s536_s18] sm:$0xff]  ;;  %v539_v38 = vld [vmem:[%s536_s18 + $0x10] sm:$0xff] }
 0x15f   : > { %816 = vperm.xlu0 %1021, %v814_v45   ;;  %v922_v62 = vcombine.high %v1311_v30, %v1315_v32  ;;  %v919_v63 = vcombine.low %v1309_v29, %v1313_v31  ;;  %v921_v34 = vcombine.low %v1311_v30, %v1315_v32  ;;  %v541_v35 = vpack.c.bf16 %v1154_v48, %v1154_v48 }
 0x161   : > { %707 = vmatpush1.bf16.msra.mxu0 %v899_v40  ;;  %748 = vmatpush1.bf16.msra.mxu1 %v901_v42  ;;  %v540_v40 = vld [vmem:[%s536_s18 + $0x18] sm:$0xff] }
 0x162   : > { %708 = vmatprep.subr.bf16.mxu0 %v904_v41  ;;  %749 = vmatprep.subr.bf16.mxu1 %v906_v44 }
 0x165   : > { %709 = vmatpush1.bf16.msra.mxu0 %v903_v46  ;;  %750 = vmatpush1.bf16.msra.mxu1 %v905_v51 }
 0x166   : > { %710 = vmatprep.subr.bf16.mxu0 %v908_v50  ;;  %751 = vmatprep.subr.bf16.mxu1 %v910_v52 }
 0x169   : > { %711 = vmatpush1.bf16.msra.mxu0 %v907_v53  ;;  %752 = vmatpush1.bf16.msra.mxu1 %v909_v55 }
 0x16a   : > { %712 = vmatprep.subr.bf16.mxu0 %v912_v54  ;;  %753 = vmatprep.subr.bf16.mxu1 %v914_v56 }
 0x16d   : > { %713 = vmatpush1.bf16.msra.mxu0 %v911_v57  ;;  %754 = vmatpush1.bf16.msra.mxu1 %v913_v59 }
 0x16e   : > { %714 = vmatprep.subr.bf16.mxu0 %v916_v58  ;;  %755 = vmatprep.subr.bf16.mxu1 %v918_v60 }
 0x171   : > { %715 = vmatpush1.bf16.msra.mxu0 %v915_v49  ;;  %756 = vmatpush1.bf16.msra.mxu1 %v917_v61 }
 0x172   : > { %716 = vmatprep.subr.bf16.mxu0 %v920_v0  ;;  %757 = vmatprep.subr.bf16.mxu1 %v922_v62 }
 0x175   : > { %717 = vmatpush1.bf16.msra.mxu0 %v919_v63  ;;  %758 = vmatpush1.bf16.msra.mxu1 %v921_v34 }
 0x178   : > { %735 = vmatmul.mubr.bf16.vlgmr.msra.gmra.mrb[0].mxu0 %v541_v35  ;;  %776 = vmatmul.mubr.bf16.vlgmr.msra.gmra.mrb[0].mxu1 %v541_v35 }
 0x1de   : > { %v817_v34 = vpop.permute.xlu0 %816 }
 0x1df   : > { %vm818_vm1 = vcmp.eq.s32.totalorder %v817_v34, 1 }
 0x24b   : > { %v736_v39 = vpop.f32.mrb[0].mxu0  ;;  %v777_v43 = vpop.f32.mrb[0].mxu1 }
 0x24c   : > { %v784_v41 = vadd.f32 %v736_v39, %v537_v36  ;;  %v738_v42 = vpop.f32.mrb[1].mxu0  ;;  %v786_v46 = vadd.f32 %v777_v43, %v539_v38  ;;  %v779_v50 = vpop.f32.mrb[1].mxu1 }
 0x24d   : > { %v785_v44 = vadd.f32 %v738_v42, %v538_v37  ;;  %v740_v45 = vpop.f32.mrb[2].mxu0  ;;  %v787_v53 = vadd.f32 %v779_v50, %v540_v40  ;;  %v781_v54 = vpop.f32.mrb[2].mxu1 }
 0x24e   : > { %v923_v51 = vmul.f32 -1.442695, %v784_v41  ;;  %v741_v52 = vpop.f32.mrb[3].mxu0  ;;  %v782_v56 = vpop.f32.mrb[3].mxu1 }
 0x24f   : > { %v924_v55 = vmul.f32 -1.442695, %v785_v44  ;;  %v925_v57 = vmul.f32 -1.442695, %v787_v53 }
 0x250   : > { %1022 = vpow2.f32 %v923_v51 }
 0x251   : > { %1024 = vpow2.f32 %v924_v55 }
 0x252   : > { %1026 = vpow2.f32 %v925_v57 }
 0x253   : > { %1028 = vtanh.f32 %v786_v46 }
 0x25a   : > { %v1023_v58 = vpop.eup %1022 }
 0x25b   : > { %v1025_v59 = vpop.eup %1024  ;;  %v791_v60 = vadd.f32 1.0, %v1023_v58 }
 0x25c   : > { %v797_v49 = vadd.f32 1.0, %v1025_v59  ;;  %v1027_v0 = vpop.eup %1026 }
 0x25d   : > { %1030 = vrcp.f32 %v791_v60  ;;  %v1029_v61 = vpop.eup %1028  ;;  %v804_v63 = vadd.f32 1.0, %v1027_v0 }
 0x25e   : > { %1032 = vrcp.f32 %v797_v49 }
 0x25f   : > { %1034 = vrcp.f32 %v804_v63 }
 0x267   : > { %v1031_v62 = vpop.eup %1030 }
 0x268   : > { %v1033_v35 = vpop.eup %1032  ;;  %v808_v36 = vmul.f32 %v1031_v62, %v1029_v61 }
 0x269   : > { %v807_v37 = vmul.f32 %v1150_v47, %v1033_v35  ;;  %v1035_v39 = vpop.eup %1034 }
 0x26b   : > { %v809_v38 = vadd.f32 %v808_v36, %v807_v37 }
 0x26d   : > { %1036 = vtanh.f32 %v809_v38  ;;  %v820_v47 = vsel %vm818_vm1, %v809_v38, %v1150_v47  }
 0x275   :  { %528 = sbr.rel (!%p525_p11) target bundleno = 342 (0x156), region = 60 }
 0x277   : > { %v1037_v40 = vpop.eup %1036 }
 0x278   : > { %v811_v41 = vmul.f32 %v1037_v40, %v1035_v39 }
 0x27a   : > { %v819_v42 = vsel %vm818_vm1, %v811_v41, %v1154_v48  }
 0x27b   : > { %v1495_v48 = vmov %v819_v42  ;;  %v1496_v60 = vmov (%p525_p11), %v819_v42 }
 0x27c PF:  { %821 = vst [vmem:[#allocation11] sm:$0xff] %v1162_v60  ;;  %s1173_s2 = smov [#allocation11]   ;;  %v1162_v60 = vphi %v1374_v60, %v1496_v60  }
 0x27d   :  { %s828_s21 = sshll.u32 %s1173_s2, 4  ;;  %s829_s21 = int_to_ptr.vmem [resolvable:$true] %s828_s21 }
 0x27e   :  { %s1104_s22 = scalar_lea.vmem %s829_s21, 128  ;;  %p1109_p13 = scmp.lt.s32.totalorder %s829_s21, %s829_s21 }
 0x27f   :  { %p1105_p12 = scmp.ne.s32.totalorder %s829_s21, %s1104_s22  ;;  %p1110_p0 = scmp.lt.s32.totalorder %s1104_s22, %s1104_s22 }
 0x281   :  { %p1111_p1 = por %p1110_p0, %p1109_p13 }
 0x283   :  { %p1112_p2 = pnand %p1111_p1, %p1105_p12 }
 0x285   :  { %1115 = shalt.err (!%p1112_p2)
}
 0x286   :  { %s1116_s0 = scalar_lea.hbm %s1494_s6, 128 }
 0x287   :  { %p1117_p3 = scmp.ne.s32.totalorder %s1494_s6, %s1116_s0  ;;  %p1120_p4 = scmp.lt.u32.totalorder %s1116_s0, %s1494_s6 }
 0x289   :  { %p1122_p5 = pnand %p1120_p4, %p1117_p3 }
 0x28b   :  { %1125 = shalt.err (!%p1122_p5)
}
 0x28c   :  { %831 = dma.vmem_to_hbm [thread:$0]  %s829_s21, 128, %s1494_s6, [#allocation7]  }
 0x28d   :  { %1146 = dma.done.wait [#allocation7], 128  }
 0x28e   :  { %1147 = vsyncadd [#allocation7], 4294967168 }
 0x28f   :  { %835 = vsyncpa [#allocation6], 1 }
 0x290   :  { %836 = vsyncpa [#allocation9], 1 }
 0x291   :  { %837 = vsyncpa [#allocation7], 1 }

</bundles_post_ra>
